<compile_context>
chip_gen: v7x
topology: tpu7x:2x2x1
jax: 0.10.0
libtpu: 0.0.40
codegen_flags: <defaults>
</compile_context>

<pallas_src>
import functools

import jax
import jax.numpy as jnp
from jax.experimental import pallas as pl
from jax.experimental.pallas import tpu as pltpu


def _round_up(x: int, m: int) -> int:
    return (x + m - 1) // m * m


def _dot_f32(a, b):
    # Plain MXU matmul with f32 accumulation.
    return jax.lax.dot_general(a, b, (((1,), (0,)), ((), ())),
                               preferred_element_type=jnp.float32)


# ----------------------------------------------------------------------------
# Fast path: embedding table resident in VMEM, on-chip one-hot gather (no DMAs).
# ----------------------------------------------------------------------------
def _lora_embedding_vmem_kernel(idv_ref, w_ref, a_t_ref, b_t_ref, o_ref, *, scaling):
    # idv_ref: VMEM (tm, 1) int32      token ids
    # w_ref:   VMEM (V, E)             embedding table (grid-invariant)
    # a_t_ref: VMEM (E, r)             lora_a.T       (grid-invariant)
    # b_t_ref: VMEM (r, V)             lora_b.T       (grid-invariant)
    # o_ref:   VMEM (tm, E)            output tile
    tm = o_ref.shape[0]
    V = w_ref.shape[0]

    ids = idv_ref[...]                                               # (tm, 1)
    hit = jax.lax.broadcasted_iota(jnp.int32, (tm, V), 1) == ids     # one-hot (tm, V)

    gathered = _dot_f32(hit.astype(w_ref.dtype), w_ref[...])         # weight[ids] (tm, E)
    xa = _dot_f32(hit.astype(a_t_ref.dtype), a_t_ref[...])           # lora_a.T[ids] (tm, r)
    lora = _dot_f32(xa.astype(b_t_ref.dtype), b_t_ref[...]) * scaling  # (tm, V) f32

    o_ref[...] = (gathered + lora).astype(o_ref.dtype)


# ----------------------------------------------------------------------------
# Large-table path: per-row HBM DMA gather straight into the output tile.
# ----------------------------------------------------------------------------
def _lora_embedding_hbm_kernel(ids_sm_ref, idv_ref, w_hbm, a_t_ref, b_t_ref,
                               o_ref, sems, *, scaling, tm, half):
    # ids_sm_ref: SMEM (n_pad,) int32   token ids (scalar prefetch, DMA addressing)
    # idv_ref:    VMEM (tm, 1) int32    same ids as a vector (for the one-hot gather)
    # w_hbm:      HBM  (V, E)           frozen embedding table
    # a_t_ref:    VMEM (E, r)           lora_a.T (grid-invariant, no HBM gather)
    # b_t_ref:    VMEM (r, V)           lora_b.T (grid-invariant)
    # o_ref:      VMEM (tm, E)          output tile (also the DMA destination)
    # sems:       DMA semaphores, shape (2,) -- one per half-tile
    E = a_t_ref.shape[0]
    t0 = pl.program_id(0) * tm

    # (1) Kick off every weight-row gather HBM -> o_ref.  Two sub-chunks, one
    #     shared semaphore each.  All SMEM id reads happen before any wait.
    @pl.loop(0, half)
    def _issue_lo(j):
        tok = ids_sm_ref[t0 + j]
        pltpu.make_async_copy(w_hbm.at[pl.ds(tok, 1), :],
                              o_ref.at[pl.ds(j, 1), :], sems.at[0]).start()

    @pl.loop(half, tm)
    def _issue_hi(j):
        tok = ids_sm_ref[t0 + j]
        pltpu.make_async_copy(w_hbm.at[pl.ds(tok, 1), :],
                              o_ref.at[pl.ds(j, 1), :], sems.at[1]).start()

    # (2) LoRA correction computed while the row gathers are in flight.
    #     lora_a.T rows are gathered on-chip with a one-hot MXU matmul.
    ids = idv_ref[...]                                               # (tm, 1)
    hit = jax.lax.broadcasted_iota(jnp.int32, (tm, E), 1) == ids     # (tm, E)
    xa = _dot_f32(hit.astype(a_t_ref.dtype), a_t_ref[...])           # (tm, r)
    lora = _dot_f32(xa.astype(b_t_ref.dtype), b_t_ref[...]) * scaling  # (tm, V) f32

    # (3) One aggregate byte-count wait per half (covers all of that half's row
    #     copies), then a single in-place f32 accumulate over the half tile.
    pltpu.make_async_copy(w_hbm.at[pl.ds(0, half), :],
                          o_ref.at[pl.ds(0, half), :], sems.at[0]).wait()
    o_ref[pl.ds(0, half), :] = (
        o_ref[pl.ds(0, half), :].astype(jnp.float32) + lora[:half]
    ).astype(o_ref.dtype)

    rest = tm - half
    pltpu.make_async_copy(w_hbm.at[pl.ds(0, rest), :],
                          o_ref.at[pl.ds(half, rest), :], sems.at[1]).wait()
    o_ref[pl.ds(half, rest), :] = (
        o_ref[pl.ds(half, rest), :].astype(jnp.float32) + lora[half:]
    ).astype(o_ref.dtype)


# ----------------------------------------------------------------------------
# Wrapper
# ----------------------------------------------------------------------------
def lora_embedding(ids, weight, lora_a, lora_b, *, scaling: float,
                   tm: int = 256, force_hbm: bool = False):
    """ids: (...,) int.  Returns (..., embedding_dim) in weight.dtype."""
    V, E = weight.shape
    r = lora_a.shape[0]
    assert lora_a.shape == (r, E)
    assert lora_b.shape == (V, r)
    # The reference module's `result += ...` only typechecks when V == E.
    assert V == E, "reference Embedding forward requires num_embeddings == embedding_dim"

    out_dtype = weight.dtype
    w_item = jnp.dtype(weight.dtype).itemsize
    p_item = jnp.dtype(lora_a.dtype).itemsize
    o_item = jnp.dtype(out_dtype).itemsize

    lead_shape = ids.shape
    ids_flat = ids.reshape(-1).astype(jnp.int32)
    n = int(ids_flat.shape[0])

    # dtype-dependent sublane alignment for (tm, E) tiles; HBM path also needs
    # the half-tile boundary aligned, hence 2x.
    sub = {4: 8, 2: 16, 1: 32}[o_item]
    quantum = 2 * sub

    # Small-table fast path: whole table VMEM-resident (safe even on v7x's 64 MiB).
    table_bytes = V * E * w_item
    use_vmem_table = (not force_hbm) and table_bytes <= 4 * 1024 * 1024

    # ---- token tile selection ------------------------------------------------
    tm = max(quantum, _round_up(min(int(tm), max(n, 1)), quantum))
    if n > quantum:                       # keep >= 2 tiles so v7x's 2 TCs both get work
        tm = min(tm, _round_up(-(-n // 2), quantum))
    resident = 2 * ((E * r + r * V) * p_item + (table_bytes if use_vmem_table else 0))
    per_tok = E * (2 * o_item + 20) + 16  # dbl-buffered out tile + f32/one-hot temps + ids
    budget = 24 * 1024 * 1024             # v7x-safe footprint target
    tm_cap = max(quantum, ((budget - resident) // per_tok) // quantum * quantum)
    tm = min(tm, tm_cap)

    n_pad = _round_up(n, tm)
    if n_pad != n:
        ids_flat = jnp.pad(ids_flat, (0, n_pad - n))  # padded tokens gather row 0, dropped later
    ids_col = ids_flat.reshape(n_pad, 1)

    a_t = lora_a.T                        # (E, r)
    b_t = lora_b.T                        # (r, V)

    vmem_limit = int(min(48 * 1024 * 1024,
                         max(16 * 1024 * 1024, resident + tm * per_tok + (8 << 20))))
    cparams = pltpu.CompilerParams(dimension_semantics=("parallel",),
                                   vmem_limit_bytes=vmem_limit)
    grid = (n_pad // tm,)
    out_shape = jax.ShapeDtypeStruct((n_pad, E), out_dtype)

    if use_vmem_table:
        kern = functools.partial(_lora_embedding_vmem_kernel, scaling=float(scaling))
        out = pl.pallas_call(
            kern,
            out_shape=out_shape,
            grid_spec=pltpu.PrefetchScalarGridSpec(
                num_scalar_prefetch=0,
                grid=grid,
                in_specs=[
                    pl.BlockSpec((tm, 1), lambda i: (i, 0)),   # ids
                    pl.BlockSpec((V, E), lambda i: (0, 0)),    # weight (VMEM resident)
                    pl.BlockSpec((E, r), lambda i: (0, 0)),    # lora_a.T
                    pl.BlockSpec((r, V), lambda i: (0, 0)),    # lora_b.T
                ],
                out_specs=pl.BlockSpec((tm, E), lambda i: (i, 0)),
            ),
            compiler_params=cparams,
        )(ids_col, weight, a_t, b_t)
    else:
        # TODO(synk): chunk ids at the wrapper level for token counts large enough to
        # overflow the SMEM scalar-prefetch budget (1-D int32 pads to next_pow2(4*n)).
        kern = functools.partial(_lora_embedding_hbm_kernel, scaling=float(scaling),
                                 tm=tm, half=tm // 2)
        out = pl.pallas_call(
            kern,
            out_shape=out_shape,
            grid_spec=pltpu.PrefetchScalarGridSpec(
                num_scalar_prefetch=1,                         # ids -> SMEM for DMA addressing
                grid=grid,
                in_specs=[
                    pl.BlockSpec((tm, 1), lambda i, ids: (i, 0)),   # ids as a VMEM vector
                    pl.BlockSpec(memory_space=pl.ANY),              # weight stays in HBM
                    pl.BlockSpec((E, r), lambda i, ids: (0, 0)),    # lora_a.T (VMEM resident)
                    pl.BlockSpec((r, V), lambda i, ids: (0, 0)),    # lora_b.T (VMEM resident)
                ],
                out_specs=pl.BlockSpec((tm, E), lambda i, ids: (i, 0)),
                scratch_shapes=[pltpu.SemaphoreType.DMA((2,))],     # one sem per half tile
            ),
            compiler_params=cparams,
        )(ids_flat, ids_col, weight, a_t, b_t)

    return out[:n].reshape(*lead_shape, E)


if __name__ == "__main__":
    batch, seq = 4, 8
    num_embeddings = embedding_dim = 256    # module's `+=` requires V == E
    r, alpha = 8, 16
    scaling = alpha / r

    key = jax.random.PRNGKey(0)
    kx, kw, ka, kb = jax.random.split(key, 4)

    ids = jax.random.randint(kx, (batch, seq), 0, num_embeddings, dtype=jnp.int32)
    weight = jax.random.normal(kw, (num_embeddings, embedding_dim), dtype=jnp.float32)
    bound = (3.0 / embedding_dim) ** 0.5     # kaiming-uniform-like for lora_a
    lora_a = jax.random.uniform(ka, (r, embedding_dim), jnp.float32, -bound, bound)
    # The module zero-inits lora_b; use small random values so the LoRA path is exercised.
    lora_b = jax.random.uniform(kb, (num_embeddings, r), jnp.float32, -0.1, 0.1)

    # Pure-JAX reference of the PyTorch forward.
    ref = weight[ids] + (lora_a.T[ids] @ lora_b.T) * scaling

    # Fast path: table resident in VMEM, on-chip one-hot gather (what this demo size hits).
    out_vmem = jax.block_until_ready(
        lora_embedding(ids, weight, lora_a, lora_b, scaling=scaling))
    # Large-table path: per-row HBM DMA gather straight into the output tile.
    out_hbm = jax.block_until_ready(
        lora_embedding(ids, weight, lora_a, lora_b, scaling=scaling, force_hbm=True))

    for name, out in (("vmem", out_vmem), ("hbm", out_hbm)):
        assert out.shape == (batch, seq, embedding_dim), (name, out.shape)
        err = float(jnp.max(jnp.abs(out - ref)))
        assert err < 1e-3, (name, err)

    print("KERNEL_OK")
</pallas_src>

<mosaic_0001>
module attributes {stable_mosaic.version = 11 : i64} {
  func.func @_lora_embedding_vmem_kernel(%arg0: i32, %arg1: memref<16x1xi32, #tpu.memory_space<vmem>>, %arg2: memref<256x256xf32, #tpu.memory_space<vmem>>, %arg3: memref<256x8xf32, #tpu.memory_space<vmem>>, %arg4: memref<8x256xf32, #tpu.memory_space<vmem>>, %arg5: memref<16x256xf32, #tpu.memory_space<vmem>>) attributes {dimension_semantics = [#tpu.dimension_semantics<parallel>], iteration_bounds = array<i64: 2>, scalar_prefetch = 0 : i64, scratch_operands = 0 : i64, tpu.core_type = #tpu.core_type<tc>, window_params = [{transform_indices = @transform_0, window_bounds = array<i64: 16, 1>}, {pipeline_mode = #tpu.pipeline_mode<synchronous>, transform_indices = @transform_1, window_bounds = array<i64: 256, 256>}, {pipeline_mode = #tpu.pipeline_mode<synchronous>, transform_indices = @transform_2, window_bounds = array<i64: 256, 8>}, {pipeline_mode = #tpu.pipeline_mode<synchronous>, transform_indices = @transform_3, window_bounds = array<i64: 8, 256>}, {transform_indices = @transform_4, window_bounds = array<i64: 16, 256>}]} {
    %c0 = arith.constant 0 : index
    %c0_0 = arith.constant 0 : index
    %0 = vector.load %arg1[%c0, %c0_0] : memref<16x1xi32, #tpu.memory_space<vmem>>, vector<16x1xi32>
    %1 = tpu.iota {dimensions = array<i32: 1>} : vector<16x256xi32>
    %2 = vector.broadcast %0 : vector<16x1xi32> to vector<16x256xi32>
    %3 = arith.cmpi eq, %1, %2 : vector<16x256xi32>
    %4 = arith.extui %3 : vector<16x256xi1> to vector<16x256xi32>
    %5 = arith.sitofp %4 : vector<16x256xi32> to vector<16x256xf32>
    %c0_1 = arith.constant 0 : index
    %c0_2 = arith.constant 0 : index
    %6 = vector.load %arg2[%c0_1, %c0_2] : memref<256x256xf32, #tpu.memory_space<vmem>>, vector<256x256xf32>
    %cst = arith.constant dense<0.000000e+00> : vector<16x256xf32>
    %7 = tpu.matmul %5, %6, %cst {dimension_numbers = #tpu.dot_dimension_numbers<[1], [0], [0], [1], [0, 0, 1, 1], [], []>} : vector<16x256xf32>, vector<256x256xf32>, vector<16x256xf32> -> vector<16x256xf32>
    %8 = arith.extui %3 : vector<16x256xi1> to vector<16x256xi32>
    %9 = arith.sitofp %8 : vector<16x256xi32> to vector<16x256xf32>
    %c0_3 = arith.constant 0 : index
    %c0_4 = arith.constant 0 : index
    %10 = vector.load %arg3[%c0_3, %c0_4] : memref<256x8xf32, #tpu.memory_space<vmem>>, vector<256x8xf32>
    %cst_5 = arith.constant dense<0.000000e+00> : vector<16x8xf32>
    %11 = tpu.matmul %9, %10, %cst_5 {dimension_numbers = #tpu.dot_dimension_numbers<[1], [0], [0], [1], [0, 0, 1, 1], [], []>} : vector<16x256xf32>, vector<256x8xf32>, vector<16x8xf32> -> vector<16x8xf32>
    %c0_6 = arith.constant 0 : index
    %c0_7 = arith.constant 0 : index
    %12 = vector.load %arg4[%c0_6, %c0_7] : memref<8x256xf32, #tpu.memory_space<vmem>>, vector<8x256xf32>
    %cst_8 = arith.constant dense<0.000000e+00> : vector<16x256xf32>
    %13 = tpu.matmul %11, %12, %cst_8 {dimension_numbers = #tpu.dot_dimension_numbers<[1], [0], [0], [1], [0, 0, 1, 1], [], []>} : vector<16x8xf32>, vector<8x256xf32>, vector<16x256xf32> -> vector<16x256xf32>
    %cst_9 = arith.constant 2.000000e+00 : f32
    %14 = vector.broadcast %cst_9 : f32 to vector<16x256xf32>
    %15 = arith.mulf %13, %14 : vector<16x256xf32>
    %16 = arith.addf %7, %15 : vector<16x256xf32>
    %c0_10 = arith.constant 0 : index
    %c0_11 = arith.constant 0 : index
    %17 = vector.load %arg5[%c0_10, %c0_11] : memref<16x256xf32, #tpu.memory_space<vmem>>, vector<16x256xf32>
    tpu.vector_store %arg5[%c0_10, %c0_11], %16 {strides = array<i32>} : memref<16x256xf32, #tpu.memory_space<vmem>>, vector<16x256xf32>,
    return
  }
  func.func @transform_0(%arg0: i32) -> (i32, i32) {
    %c0_i32 = arith.constant 0 : i32
    %c0_i32_0 = arith.constant 0 : i32
    return %arg0, %c0_i32 : i32, i32
  }
  func.func @transform_1(%arg0: i32) -> (i32, i32) {
    %c0_i32 = arith.constant 0 : i32
    %c0_i32_0 = arith.constant 0 : i32
    %c0_i32_1 = arith.constant 0 : i32
    return %c0_i32, %c0_i32_0 : i32, i32
  }
  func.func @transform_2(%arg0: i32) -> (i32, i32) {
    %c0_i32 = arith.constant 0 : i32
    %c0_i32_0 = arith.constant 0 : i32
    %c0_i32_1 = arith.constant 0 : i32
    return %c0_i32, %c0_i32_0 : i32, i32
  }
  func.func @transform_3(%arg0: i32) -> (i32, i32) {
    %c0_i32 = arith.constant 0 : i32
    %c0_i32_0 = arith.constant 0 : i32
    %c0_i32_1 = arith.constant 0 : i32
    return %c0_i32, %c0_i32_0 : i32, i32
  }
  func.func @transform_4(%arg0: i32) -> (i32, i32) {
    %c0_i32 = arith.constant 0 : i32
    %c0_i32_0 = arith.constant 0 : i32
    return %arg0, %c0_i32 : i32, i32
  }
}

</mosaic_0001>

<bundles_post_ra>
// kernel: tpu_custom_call.1
= control target key start
LH: loop header
LB: loop body
LE: loop exit
PB: predicated region body
PF: predicated region fallthrough
CT: control target
= control target key end

     0   :  { %9 = vsyncpa [#allocation3], 0  ;;  %s1260_s0 = inlined_call_operand.vmem [shape: s32[32,1], index: 0, kind: input, shape index: {}]   ;;  %s1261_s1 = inlined_call_operand.hbm [shape: f32[256,256], index: 1, kind: input, shape index: {}]   ;;  %s1262_s2 = inlined_call_operand.vmem [shape: f32[256,8], index: 2, kind: input, shape index: {}]   ;;  %s1263_s3 = inlined_call_operand.vmem [shape: f32[8,256], index: 3, kind: input, shape index: {}]   ;;  %s1264_s4 = inlined_call_operand.hbm [shape: f32[32,256], index: 4, kind: output, shape index: {}]  }
   0x1   :  { %10 = vsyncpa [#allocation4], 0 }
   0x2   :  { %12 = vsyncpa [#allocation4 + $0x1], 0  ;;  %s1021_s15 = smov 0   ;;  %s1023_s16 = smov 0  }
   0x3   :  { %s1025_s17 = smov 0   ;;  %s1027_s18 = smov 0  }
   0x4 LB: > { %s1042_s19 = sadd.s32 4294967295, %s985_s18   ;;  %s668_s20 = sadd.s32 4294967294, %s985_s18   ;;  %s985_s18 = sphi %s1027_s18, %s1280_s18   ;;  %s981_s17 = sphi %s1025_s17, %s1279_s17   ;;  %s977_s16 = sphi %s1023_s16, %s1278_s16   ;;  %s973_s15 = sphi %s1021_s15, %s1277_s15  }
   0x5   : > { %s1046_s21 = sadd.s32 1, %s985_s18   ;;  %s114_s22 = sadd.s32 1, %s981_s17 }
   0x6   : > { %s111_s23 = ssub.s32 %s985_s18, %s1046_s21  ;;  %p124_p0 = scmp.ne.s32.totalorder %s981_s17, %s977_s16 }
   0x7   : > { %p112_p1 = scmp.eq.s32.totalorder %s111_s23, 0  ;;  %p125_p2 = scmp.eq.s32.totalorder %s1042_s19, 1 }
   0x8   : > { %p130_p3 = scmp.ne.s32.totalorder %s977_s16, %s973_s15  ;;  %p131_p4 = scmp.eq.s32.totalorder %s668_s20, 1 }
   0x9   : > { %s1057_s24 = scalar_select %p112_p1, %s981_s17, %s114_s22  }
   0xa   : > { %p1059_p5 = por %p125_p2, %p124_p0  ;;  %p1063_p6 = por %p131_p4, %p130_p3 }
   0xb   : > { %p669_p7 = scmp.ge.s32.totalorder %s985_s18, 1  ;;  %p138_p8 = scmp.lt.s32.totalorder %s985_s18, 3 }
   0xc   : > { %s1268_s25 = scalar_select %p1059_p5, 1, 0 }
   0xd   : > { %s1269_s26 = scalar_select %p1063_p6, 1, 0 }
   0xe   : > { %p1265_p9 = scmp.eq.s32.totalorder %s1042_s19, 0  ;;  %p1070_p10 = pnand %p669_p7, %p138_p8 }
   0xf   : > { %s987_s28 = smov [#allocation2]   ;;  %s891_s7 = scalar_lea.hbm %s1261_s1, 8192 }
  0x10   : > { %s1270_s27 = scalar_select %p1070_p10, 1, 0 }
  0x11   : > { %s150_s29 = sshll.u32 %s987_s28, 4  ;;  %p839_p11 = pneg %p1070_p10  ;;  %s151_s29 = int_to_ptr.vmem [resolvable:$true] %s150_s29 }
  0x12   : > { %p892_p13 = scmp.ne.s32.totalorder %s1261_s1, %s891_s7  ;;  %p898_p3 = scmp.lt.u32.totalorder %s891_s7, %s1261_s1 }
  0x13   : > { %p1078_p12 = pnand %p1265_p9, %p839_p11 }
  0x15   : > { %p893_p0 = pneg %p1078_p12 }
  0x17   : > { %p894_p1 = pnand %p893_p0, %p892_p13 }
  0x19   : > { %p895_p2 = pneg %p894_p1 }
  0x1b   : > { %p900_p4 = pnand %p898_p3, %p895_p2 }
  0x1d   : > { %903 = shalt.err (!%p900_p4)
}
  0x1e   : > { %s904_s12 = scalar_lea.vmem %s151_s29, 8192  ;;  %p912_p9 = scmp.lt.s32.totalorder %s151_s29, %s151_s29 }
  0x1f   : > { %p905_p7 = scmp.ne.s32.totalorder %s151_s29, %s904_s12  ;;  %p913_p6 = scmp.lt.s32.totalorder %s904_s12, %s904_s12 }
  0x21   : > { %p907_p8 = pnand %p905_p7, %p893_p0  ;;  %p914_p5 = por %p913_p6, %p912_p9 }
  0x23   : > { %p908_p11 = pneg %p907_p8 }
  0x25   : > { %p915_p10 = pnand %p914_p5, %p908_p11 }
  0x27   : > { %918 = shalt.err (!%p915_p10)
}
  0x28   : > { %s988_s13 = smov 256   ;;  %s989_s14 = smov 16  }
  0x29   : > { %842 = dma.hbm_to_vmem [thread:$0]  (!%p1078_p12), %s1261_s1, 8192, %s151_s29, [#allocation3], %s988_s13, %s988_s13, %s989_s14  }
  0x2a   : > { %p1272_p13 = scmp.ne.s32.totalorder %s1270_s27, 0 }
  0x2b   : > { %p1273_p1 = scmp.eq.s32.totalorder (!%p1272_p13), %s1042_s19, 0 }
  0x2c   : > { %181 = sbr.rel (%p1272_p13) target bundleno = 640 (0x280), region = 36 }
  0x33   : > { %964 = dma.done.wait (%p1273_p1), [#allocation3], 8192   ;;  %p1274_p0 = pmov %p1273_p1 }
  0x34   : > { %s675_s23 = sshll.u32 %s1042_s19, 1  ;;  %v990_v0 = vmov 0   ;;  %v238_v3 = vld [vmem:[#allocation2 + $0x8] sm:$0xff]  ;;  %v240_v4 = vld [vmem:[#allocation2 + $0x18] sm:$0xff]  ;;  %v237_v5 = vld [vmem:[#allocation2] sm:$0xff]  ;;  %vm410_vm4 = vcmask 64512  }
  0x35   : > { %966 = vsyncadd (%p1274_p0), [#allocation3], 4294959104  ;;  %890 = vset.pattern.permute.xlu0 %v990_v0  ;;  %p208_p5 = scmp.lt.s32.totalorder %s675_s23, 3  ;;  %v239_v6 = vld [vmem:[#allocation2 + $0x10] sm:$0xff]  ;;  %v769_v7 = vpack.c.bf16 %v240_v4, %v238_v3  ;;  %v242_v9 = vld [vmem:[#allocation2 + $0x28] sm:$0xff]  ;;  %s204_s27 = sand.u32 1, %s977_s16  }
  0x36   : > { %v771_v8 = vpack.c.bf16 %v239_v6, %v237_v5  ;;  %v244_v10 = vld [vmem:[#allocation2 + $0x38] sm:$0xff]  ;;  %v241_v11 = vld [vmem:[#allocation2 + $0x20] sm:$0xff]  ;;  %v243_v13 = vld [vmem:[#allocation2 + $0x30] sm:$0xff]  ;;  %s674_s6 = sshll.u32 %s204_s27, 5  ;;  %s698_s9 = sshll.u32 %s1042_s19, 9 }
  0x37   : > { %s1282_s23 = smov (!%p208_p5, %s675_s23), 3  ;;  %v773_v12 = vpack.c.bf16 %v244_v10, %v242_v9  ;;  %v246_v14 = vld [vmem:[#allocation2 + $0x48] sm:$0xff]  ;;  %v248_v15 = vld [vmem:[#allocation2 + $0x58] sm:$0xff]  ;;  %770 = vmatprep.subr.bf16.mxu1 %v769_v7  ;;  %v775_v16 = vpack.c.bf16 %v243_v13, %v241_v11  ;;  %v245_v18 = vld [vmem:[#allocation2 + $0x40] sm:$0xff]  ;;  %s206_s7 = scalar_lea.vmem [#allocation5], %s674_s6 }
  0x38   : > { %s676_s28 = sshll.u32 %s1282_s23, 3  ;;  %772 = vmatpush1.bf16.msra.mxu1 %v771_v8  ;;  %v777_v17 = vpack.c.bf16 %v248_v15, %v246_v14  ;;  %v247_v19 = vld [vmem:[#allocation2 + $0x50] sm:$0xff]  ;;  %v250_v20 = vld [vmem:[#allocation2 + $0x68] sm:$0xff]  ;;  %v252_v21 = vld [vmem:[#allocation2 + $0x78] sm:$0xff]  ;;  %s594_s8 = sshll.u32 %s206_s7, 4  ;;  %s1212_s8 = int_to_ptr.vmem [resolvable:$true] %s594_s8 }
  0x39   : > { %s211_s29 = scalar_lea.vmem %s1260_s0, %s676_s28  ;;  %774 = vmatprep.subr.bf16.mxu1 %v773_v12  ;;  %v779_v22 = vpack.c.bf16 %v247_v19, %v245_v18  ;;  %v781_v23 = vpack.c.bf16 %v252_v21, %v250_v20  ;;  %v249_v24 = vld [vmem:[#allocation2 + $0x60] sm:$0xff]  ;;  %v251_v25 = vld [vmem:[#allocation2 + $0x70] sm:$0xff]  ;;  %v254_v26 = vld [vmem:[#allocation2 + $0x88] sm:$0xff]  ;;  %s1217_s12 = scalar_lea.hbm %s1264_s4, %s698_s9 }
  0x3a   : > { %v214_v1 = vld [vmem:[%s211_s29] sm:$0xff]  ;;  %v215_v2 = vld [vmem:[%s211_s29 + $0x8] sm:$0xff]  ;;  %v256_v27 = vld [vmem:[#allocation2 + $0x98] sm:$0xff]  ;;  %v783_v32 = vpack.c.bf16 %v251_v25, %v249_v24  ;;  %s1219_s19 = scalar_lea.sflag [#allocation4], %s204_s27  ;;  %s919_s13 = scalar_lea.vmem %s1212_s8, 512 }
  0x3b   : > { %220 = vperm.xlu0 %890, %v214_v1   ;;  %v317_v28 = vld [vmem:[%s1262_s2 + $0x80] sm:$0xff]  ;;  %v318_v29 = vld [vmem:[%s1262_s2 + $0x88] sm:$0xff]  ;;  %v255_v34 = vld [vmem:[#allocation2 + $0x90] sm:$0xff]  ;;  %v785_v36 = vpack.c.bf16 %v256_v27, %v254_v26  ;;  %p920_p6 = scmp.ne.s32.totalorder %s1212_s8, %s919_s13  ;;  %p1275_p9 = scmp.ne.s32.totalorder %s1268_s25, 0 }
  0x3c   : > { %776 = vmatpush1.bf16.msra.mxu1 %v775_v16  ;;  %v737_v30 = vpack.c.bf16 %v318_v29, %v317_v28  ;;  %v301_v31 = vld [vmem:[%s1262_s2] sm:$0xff]  ;;  %v302_v35 = vld [vmem:[%s1262_s2 + $0x8] sm:$0xff]  ;;  %v319_v39 = vld [vmem:[%s1262_s2 + $0x90] sm:$0xff]  ;;  %s993_s14 = smov [#allocation5]  }
  0x3d   : > { %778 = vmatprep.subr.bf16.mxu1 %v777_v17  ;;  %v253_v33 = vld [vmem:[#allocation2 + $0x80] sm:$0xff]  ;;  %v258_v37 = vld [vmem:[#allocation2 + $0xa8] sm:$0xff]  ;;  %v739_v38 = vpack.c.bf16 %v302_v35, %v301_v31  ;;  %v320_v40 = vld [vmem:[%s1262_s2 + $0x98] sm:$0xff]  ;;  %p921_p10 = pnand %p920_p6, %p1275_p9  ;;  %s923_s20 = sshll.u32 %s993_s14, 4  ;;  %s924_s20 = int_to_ptr.vmem [resolvable:$false] %s923_s20 }
  0x3e   : > { %738 = vmatprep.subr.bf16.mxu0 %v737_v30  ;;  %v260_v41 = vld [vmem:[#allocation2 + $0xb8] sm:$0xff]  ;;  %v741_v42 = vpack.c.bf16 %v320_v40, %v319_v39  ;;  %v303_v43 = vld [vmem:[%s1262_s2 + $0x10] sm:$0xff]  ;;  %v321_v46 = vld [vmem:[%s1262_s2 + $0xa0] sm:$0xff]  ;;  %v787_v47 = vpack.c.bf16 %v255_v34, %v253_v33  ;;  %s925_s22 = scalar_lea.vmem %s924_s20, 1024  ;;  %p926_p2 = scmp.lt.s32.totalorder %s1212_s8, %s924_s20 }
  0x3f   : > { %223 = vperm.xlu0 %890, %v215_v2   ;;  %v304_v44 = vld [vmem:[%s1262_s2 + $0x18] sm:$0xff]  ;;  %740 = vmatpush3.bf16.msra.mxu0 %v739_v38  ;;  %v257_v48 = vld [vmem:[#allocation2 + $0xa0] sm:$0xff]  ;;  %v259_v49 = vld [vmem:[#allocation2 + $0xb0] sm:$0xff]  ;;  %v789_v51 = vpack.c.bf16 %v260_v41, %v258_v37  ;;  %p922_p12 = pneg %p921_p10  ;;  %p927_p3 = scmp.lt.s32.totalorder %s925_s22, %s919_s13 }
  0x40   : > { %780 = vmatpush1.bf16.msra.mxu1 %v779_v22  ;;  %v743_v45 = vpack.c.bf16 %v304_v44, %v303_v43  ;;  %742 = vmatprep.subr.bf16.mxu0 %v741_v42  ;;  %v322_v50 = vld [vmem:[%s1262_s2 + $0xa8] sm:$0xff]  ;;  %v305_v54 = vld [vmem:[%s1262_s2 + $0x20] sm:$0xff]  ;;  %v264_v56 = vld [vmem:[#allocation2 + $0xd8] sm:$0xff]  ;;  %v791_v60 = vpack.c.bf16 %v259_v49, %v257_v48 }
  0x41   : > { %782 = vmatprep.subr.bf16.mxu1 %v781_v23  ;;  %v262_v52 = vld [vmem:[#allocation2 + $0xc8] sm:$0xff]  ;;  %v745_v53 = vpack.c.bf16 %v322_v50, %v321_v46  ;;  %v323_v57 = vld [vmem:[%s1262_s2 + $0xb0] sm:$0xff]  ;;  %v324_v58 = vld [vmem:[%s1262_s2 + $0xb8] sm:$0xff]  ;;  %p928_p4 = por %p927_p3, %p926_p2 }
  0x42   : > { %v306_v55 = vld [vmem:[%s1262_s2 + $0x28] sm:$0xff]  ;;  %v261_v61 = vld [vmem:[#allocation2 + $0xc0] sm:$0xff]  ;;  %v749_v62 = vpack.c.bf16 %v324_v58, %v323_v57  ;;  %v307_v63 = vld [vmem:[%s1262_s2 + $0x30] sm:$0xff]  ;;  %v793_v1 = vpack.c.bf16 %v264_v56, %v262_v52 }
  0x43   : > { %744 = vmatpush3.bf16.msra.mxu0 %v743_v45  ;;  %v747_v59 = vpack.c.bf16 %v306_v55, %v305_v54  ;;  %v308_v0 = vld [vmem:[%s1262_s2 + $0x38] sm:$0xff]  ;;  %v263_v2 = vld [vmem:[#allocation2 + $0xd0] sm:$0xff]  ;;  %v325_v3 = vld [vmem:[%s1262_s2 + $0xc0] sm:$0xff]  ;;  %p929_p7 = pnand %p928_p4, %p922_p12 }
  0x44   : > { %784 = vmatpush1.bf16.msra.mxu1 %v783_v32  ;;  %746 = vmatprep.subr.bf16.mxu0 %v745_v53  ;;  %v326_v4 = vld [vmem:[%s1262_s2 + $0xc8] sm:$0xff]  ;;  %v268_v6 = vld [vmem:[#allocation2 + $0xf8] sm:$0xff]  ;;  %v751_v7 = vpack.c.bf16 %v308_v0, %v307_v63  ;;  %v795_v8 = vpack.c.bf16 %v263_v2, %v261_v61  ;;  %v265_v9 = vld [vmem:[#allocation2 + $0xe0] sm:$0xff] }
  0x45   : > { %786 = vmatprep.subr.bf16.mxu1 %v785_v36  ;;  %v266_v5 = vld [vmem:[#allocation2 + $0xe8] sm:$0xff]  ;;  %v753_v10 = vpack.c.bf16 %v326_v4, %v325_v3  ;;  %v309_v11 = vld [vmem:[%s1262_s2 + $0x40] sm:$0xff]  ;;  %v267_v14 = vld [vmem:[#allocation2 + $0xf0] sm:$0xff] }
  0x46   : > { %v310_v12 = vld [vmem:[%s1262_s2 + $0x48] sm:$0xff]  ;;  %v797_v13 = vpack.c.bf16 %v268_v6, %v266_v5  ;;  %v327_v15 = vld [vmem:[%s1262_s2 + $0xd0] sm:$0xff]  ;;  %v328_v16 = vld [vmem:[%s1262_s2 + $0xd8] sm:$0xff]  ;;  %v799_v20 = vpack.c.bf16 %v267_v14, %v265_v9 }
  0x47   : > { %748 = vmatpush3.bf16.msra.mxu0 %v747_v59  ;;  %v270_v17 = vld [vmem:[#allocation2 + $0x108] sm:$0xff]  ;;  %v272_v18 = vld [vmem:[#allocation2 + $0x118] sm:$0xff]  ;;  %v755_v19 = vpack.c.bf16 %v310_v12, %v309_v11  ;;  %v269_v21 = vld [vmem:[#allocation2 + $0x100] sm:$0xff]  ;;  %v757_v22 = vpack.c.bf16 %v328_v16, %v327_v15 }
  0x48   : > { %788 = vmatpush1.bf16.msra.mxu1 %v787_v47  ;;  %750 = vmatprep.subr.bf16.mxu0 %v749_v62  ;;  %v311_v23 = vld [vmem:[%s1262_s2 + $0x50] sm:$0xff]  ;;  %v312_v24 = vld [vmem:[%s1262_s2 + $0x58] sm:$0xff]  ;;  %v801_v25 = vpack.c.bf16 %v272_v18, %v270_v17  ;;  %v329_v27 = vld [vmem:[%s1262_s2 + $0xe0] sm:$0xff] }
  0x49   : > { %790 = vmatprep.subr.bf16.mxu1 %v789_v51  ;;  %v271_v26 = vld [vmem:[#allocation2 + $0x110] sm:$0xff]  ;;  %v330_v28 = vld [vmem:[%s1262_s2 + $0xe8] sm:$0xff]  ;;  %v276_v30 = vld [vmem:[#allocation2 + $0x138] sm:$0xff]  ;;  %v759_v31 = vpack.c.bf16 %v312_v24, %v311_v23 }
  0x4a   : > { %v274_v29 = vld [vmem:[#allocation2 + $0x128] sm:$0xff]  ;;  %v803_v32 = vpack.c.bf16 %v271_v26, %v269_v21  ;;  %v273_v33 = vld [vmem:[#allocation2 + $0x120] sm:$0xff]  ;;  %v761_v34 = vpack.c.bf16 %v330_v28, %v329_v27  ;;  %v275_v38 = vld [vmem:[#allocation2 + $0x130] sm:$0xff]  ;;  %v992_v27 = vmov 0.0  }
  0x4b   : > { %752 = vmatpush3.bf16.msra.mxu0 %v751_v7  ;;  %v313_v35 = vld [vmem:[%s1262_s2 + $0x60] sm:$0xff]  ;;  %v314_v36 = vld [vmem:[%s1262_s2 + $0x68] sm:$0xff]  ;;  %v805_v37 = vpack.c.bf16 %v276_v30, %v274_v29  ;;  %v331_v39 = vld [vmem:[%s1262_s2 + $0xf0] sm:$0xff]  ;;  %v807_v44 = vpack.c.bf16 %v275_v38, %v273_v33 }
  0x4c   : > { %792 = vmatpush1.bf16.msra.mxu1 %v791_v60  ;;  %754 = vmatprep.subr.bf16.mxu0 %v753_v10  ;;  %v332_v40 = vld [vmem:[%s1262_s2 + $0xf8] sm:$0xff]  ;;  %v278_v41 = vld [vmem:[#allocation2 + $0x148] sm:$0xff]  ;;  %v763_v43 = vpack.c.bf16 %v314_v36, %v313_v35  ;;  %v315_v46 = vld [vmem:[%s1262_s2 + $0x70] sm:$0xff] }
  0x4d   : > { %794 = vmatprep.subr.bf16.mxu1 %v793_v1  ;;  %v280_v42 = vld [vmem:[#allocation2 + $0x158] sm:$0xff]  ;;  %v765_v45 = vpack.c.bf16 %v332_v40, %v331_v39  ;;  %v277_v49 = vld [vmem:[#allocation2 + $0x140] sm:$0xff]  ;;  %v279_v50 = vld [vmem:[#allocation2 + $0x150] sm:$0xff] }
  0x4e   : > { %v316_v47 = vld [vmem:[%s1262_s2 + $0x78] sm:$0xff]  ;;  %v809_v48 = vpack.c.bf16 %v280_v42, %v278_v41  ;;  %v282_v51 = vld [vmem:[#allocation2 + $0x168] sm:$0xff]  ;;  %v811_v54 = vpack.c.bf16 %v279_v50, %v277_v49  ;;  %v281_v56 = vld [vmem:[#allocation2 + $0x160] sm:$0xff] }
  0x4f   : > { %756 = vmatpush3.bf16.msra.mxu0 %v755_v19  ;;  %v284_v52 = vld [vmem:[#allocation2 + $0x178] sm:$0xff]  ;;  %v767_v53 = vpack.c.bf16 %v316_v47, %v315_v46  ;;  %v283_v57 = vld [vmem:[#allocation2 + $0x170] sm:$0xff]  ;;  %v409_v58 = vld [vmem:[%s1263_s3 + $0x8] sm:$0xff] }
  0x50   : > { %796 = vmatpush1.bf16.msra.mxu1 %v795_v8  ;;  %758 = vmatprep.subr.bf16.mxu0 %v757_v22  ;;  %v813_v55 = vpack.c.bf16 %v284_v52, %v282_v51  ;;  %v286_v59 = vld [vmem:[#allocation2 + $0x188] sm:$0xff]  ;;  %v288_v60 = vld [vmem:[#allocation2 + $0x198] sm:$0xff]  ;;  %v815_v61 = vpack.c.bf16 %v283_v57, %v281_v56  ;;  %v285_v63 = vld [vmem:[#allocation2 + $0x180] sm:$0xff] }
  0x51   : > { %798 = vmatprep.subr.bf16.mxu1 %v797_v13  ;;  %v817_v62 = vpack.c.bf16 %v288_v60, %v286_v59  ;;  %v287_v0 = vld [vmem:[#allocation2 + $0x190] sm:$0xff]  ;;  %v290_v1 = vld [vmem:[#allocation2 + $0x1a8] sm:$0xff]  ;;  %v292_v2 = vld [vmem:[#allocation2 + $0x1b8] sm:$0xff] }
  0x52   : > { %v819_v3 = vpack.c.bf16 %v287_v0, %v285_v63  ;;  %v821_v4 = vpack.c.bf16 %v292_v2, %v290_v1  ;;  %v289_v5 = vld [vmem:[#allocation2 + $0x1a0] sm:$0xff]  ;;  %v291_v6 = vld [vmem:[#allocation2 + $0x1b0] sm:$0xff]  ;;  %v294_v7 = vld [vmem:[#allocation2 + $0x1c8] sm:$0xff] }
  0x53   : > { %760 = vmatpush3.bf16.msra.mxu0 %v759_v31  ;;  %v296_v8 = vld [vmem:[#allocation2 + $0x1d8] sm:$0xff]  ;;  %v823_v9 = vpack.c.bf16 %v291_v6, %v289_v5  ;;  %v293_v11 = vld [vmem:[#allocation2 + $0x1c0] sm:$0xff]  ;;  %v295_v12 = vld [vmem:[#allocation2 + $0x1d0] sm:$0xff] }
  0x54   : > { %800 = vmatpush1.bf16.msra.mxu1 %v799_v20  ;;  %762 = vmatprep.subr.bf16.mxu0 %v761_v34  ;;  %v825_v10 = vpack.c.bf16 %v296_v8, %v294_v7  ;;  %v298_v13 = vld [vmem:[#allocation2 + $0x1e8] sm:$0xff]  ;;  %v300_v14 = vld [vmem:[#allocation2 + $0x1f8] sm:$0xff]  ;;  %v827_v15 = vpack.c.bf16 %v295_v12, %v293_v11  ;;  %v297_v17 = vld [vmem:[#allocation2 + $0x1e0] sm:$0xff]  ;;  %v216_v20 = vlaneseq }
  0x55   : > { %802 = vmatprep.subr.bf16.mxu1 %v801_v25  ;;  %v829_v16 = vpack.c.bf16 %v300_v14, %v298_v13  ;;  %v299_v18 = vld [vmem:[#allocation2 + $0x1f0] sm:$0xff]  ;;  %v408_v24 = vld [vmem:[%s1263_s3] sm:$0xff]  ;;  %v991_v25 = vmov 1.0  }
  0x56   : > { %v831_v19 = vpack.c.bf16 %v299_v18, %v297_v17  ;;  %v217_v21 = vand.u32 127, %v216_v20 }
  0x57   : > { %764 = vmatpush3.bf16.msra.mxu0 %v763_v43 }
  0x58   : > { %804 = vmatpush1.bf16.msra.mxu1 %v803_v32  ;;  %766 = vmatprep.subr.bf16.mxu0 %v765_v45  ;;  %v218_v22 = vadd.s32 128, %v217_v21 }
  0x59   : > { %806 = vmatprep.subr.bf16.mxu1 %v805_v37 }
  0x5b   : > { %768 = vmatpush3.bf16.msra.mxu0 %v767_v53 }
  0x5c   : > { %808 = vmatpush1.bf16.msra.mxu1 %v807_v44  ;;  %417 = vmatprep.subr.mxu0 %v409_v58 }
  0x5d   : > { %810 = vmatprep.subr.bf16.mxu1 %v809_v48 }
  0x60   : > { %812 = vmatpush1.bf16.msra.mxu1 %v811_v54 }
  0x61   : > { %814 = vmatprep.subr.bf16.mxu1 %v813_v55 }
  0x64   : > { %816 = vmatpush1.bf16.msra.mxu1 %v815_v61 }
  0x65   : > { %818 = vmatprep.subr.bf16.mxu1 %v817_v62 }
  0x68   : > { %820 = vmatpush1.bf16.msra.mxu1 %v819_v3 }
  0x69   : > { %822 = vmatprep.subr.bf16.mxu1 %v821_v4 }
  0x6c   : > { %824 = vmatpush1.bf16.msra.mxu1 %v823_v9 }
  0x6d   : > { %826 = vmatprep.subr.bf16.mxu1 %v825_v10 }
  0x70   : > { %828 = vmatpush1.bf16.msra.mxu1 %v827_v15 }
  0x71   : > { %830 = vmatprep.subr.bf16.mxu1 %v829_v16 }
  0x74   : > { %832 = vmatpush1.bf16.msra.mxu1 %v831_v19 }
  0xba   : > { %v221_v23 = vpop.permute.xlu0 %220 }
  0xbb   : > { %vm225_vm0 = vcmp.eq.s32.totalorder %v217_v21, %v221_v23  ;;  %vm226_vm1 = vcmp.eq.s32.totalorder %v218_v22, %v221_v23 }
  0xbc   : > { %681 = vmatprep.mubr.msk.f32.mxu0 %vm226_vm1, %v991_v25  ;;  %687 = vmatprep.mubr.msk.f32.mxu1 %vm226_vm1, %v991_v25 }
  0xbd   : > { %682 = vmatmul.mubr.msk.f32.vlgmr.msra.gmra.mrb[0].mxu0 %vm225_vm0, %v991_v25  ;;  %688 = vmatmul.mubr.msk.f32.vlgmr.msra.gmra.mrb[0].mxu1 %vm225_vm0, %v991_v25 }
  0xbe   : > { %v224_v26 = vpop.permute.xlu0 %223  ;;  %418 = vmatpush1.msra.mxu0 %v408_v24 }
  0xbf   : > { %vm227_vm2 = vcmp.eq.s32.totalorder %v217_v21, %v224_v26  ;;  %vm228_vm3 = vcmp.eq.s32.totalorder %v218_v22, %v224_v26 }
  0xc0   : > { %683 = vmatprep.mubr.msk.f32.mxu0 %vm228_vm3, %v991_v25  ;;  %689 = vmatprep.mubr.msk.f32.mxu1 %vm228_vm3, %v991_v25 }
  0xc1   : > { %684 = vmatmul.mubr.msk.f32.gmra.mrb[2].mxu0 %vm227_vm2, %v991_v25  ;;  %690 = vmatmul.mubr.msk.f32.gmra.mrb[2].mxu1 %vm227_vm2, %v991_v25 }
  0xc2   : > { %481 = vmatprep.mubr.f32.mxu0 %v992_v27 }
 0x190   : > { %v731_v28 = vpop.f32.mrb[0].mxu0  ;;  %v564_v29 = vpop.f32.mrb[0].mxu1 }
 0x191   : > { %v732_v30 = vpop.f32.mrb[1].mxu0  ;;  %v566_v31 = vpop.f32.mrb[1].mxu1 }
 0x192   : > { %v733_v32 = vadd.f32 %v732_v30, %v731_v28 }
 0x194   : > { %v734_v33 = vpop.f32.mrb[2].mxu0  ;;  %685 = vmatmul.mubr.msk.f32.vlgmr.msra.gmra.mrb[4].mxu0 %vm410_vm4, %v733_v32  ;;  %v570_v34 = vpop.f32.mrb[2].mxu1 }
 0x195   : > { %v735_v35 = vpop.f32.mrb[3].mxu0  ;;  %v572_v36 = vpop.f32.mrb[3].mxu1  ;;  %487 = vmatprep.mubr.f32.mxu0 %v992_v27 }
 0x196   : > { %v736_v37 = vadd.f32 %v735_v35, %v734_v33 }
 0x198   : > { %686 = vmatmul.mubr.msk.f32.gmra.mrb[6].mxu0 %vm410_vm4, %v736_v37 }
 0x267   : > { %v483_v38 = vpop.f32.mrb[4].mxu0 }
 0x268   : > { %v494_v39 = vmul.f32 2.0, %v483_v38  ;;  %v485_v40 = vpop.f32.mrb[5].mxu0 }
 0x269   : > { %v495_v41 = vmul.f32 2.0, %v485_v40 }
 0x26a   : > { %v565_v42 = vadd.f32 %v564_v29, %v494_v39 }
 0x26b   : > { %v567_v43 = vadd.f32 %v566_v31, %v495_v41  ;;  %v489_v44 = vpop.f32.mrb[6].mxu0 }
 0x26c   : > { %575 = vst [vmem:[%s206_s7] sm:$0xff] %v565_v42  ;;  %v496_v45 = vmul.f32 2.0, %v489_v44  ;;  %v491_v46 = vpop.f32.mrb[7].mxu0 }
 0x26d   : > { %576 = vst [vmem:[%s206_s7 + $0x8] sm:$0xff] %v567_v43  ;;  %v497_v47 = vmul.f32 2.0, %v491_v46 }
 0x26e   : > { %v571_v48 = vadd.f32 %v570_v34, %v496_v45 }
 0x26f   : > { %v573_v49 = vadd.f32 %v572_v36, %v497_v47 }
 0x270   : > { %577 = vst [vmem:[%s206_s7 + $0x10] sm:$0xff] %v571_v48 }
 0x271   : > { %578 = vst [vmem:[%s206_s7 + $0x18] sm:$0xff] %v573_v49 }
 0x272   : > { %932 = shalt.err (!%p929_p7)
}
 0x273   : > { %s933_s23 = scalar_lea.hbm %s1217_s12, 512  ;;  %s937_s5 = scalar_lea.hbm %s1264_s4, 1024 }
 0x274   : > { %p934_p8 = scmp.ne.s32.totalorder %s1217_s12, %s933_s23  ;;  %p938_p1 = scmp.lt.u32.totalorder %s1217_s12, %s1264_s4 }
 0x275   : > { %p939_p0 = scmp.lt.u32.totalorder %s937_s5, %s933_s23  ;;  %p941_p6 = scmp.lt.u32.totalorder %s933_s23, %s1217_s12 }
 0x276   : > { %p935_p11 = pnand %p934_p8, %p1275_p9 }
 0x277   : > { %p940_p5 = por %p939_p0, %p938_p1 }
 0x278   : > { %p936_p13 = pneg %p935_p11 }
 0x279   : > { %p942_p10 = por %p941_p6, %p940_p5 }
 0x27b   : > { %p943_p12 = pnand %p942_p10, %p936_p13 }
 0x27d   : > { %946 = shalt.err (!%p943_p12)
}
 0x27e   : > { %s994_s6 = smov 256   ;;  %s995_s7 = smov 16  }
 0x27f   : > { %837 = dma.vmem_to_hbm [thread:$0]  (%p1275_p9), %s1212_s8, 512, %s1217_s12, %s1219_s19, %s994_s6, %s994_s6, %s995_s7  }
 0x280 PF: > { %p849_p2 = scmp.ge.s32.totalorder %s985_s18, 2  ;;  %s609_s9 = sand.u32 1, %s973_s15  }
 0x281   : > { %p1276_p3 = scmp.ne.s32.totalorder %s1269_s26, 0  ;;  %s610_s10 = scalar_lea.sflag [#allocation4], %s609_s9 }
 0x283   : > { %p844_p4 = pnand %p849_p2, %p1276_p3 }
 0x285   : > { %968 = dma.done.wait (!%p844_p4), %s610_s10, 512  }
 0x286   : > { %970 = vsyncadd (!%p844_p4), %s610_s10, 4294966784  ;;  %p15_p7 = scmp.ge.s32.totalorder %s1046_s21, 4   ;;  %s1277_s15 = smov %s977_s16 }
 0x287   : > { %s1278_s16 = smov %s981_s17  ;;  %s1279_s17 = smov %s1057_s24 }
 0x288   : > { %s1280_s18 = smov %s1046_s21  ;;  %17 = sbr.rel (!%p15_p7) target bundleno = 4 (0x4), region = 76 }
 0x28f   :  { %615 = vsyncpa [#allocation3], 1 }
 0x290   :  { %617 = vsyncpa [#allocation3 + $0x1], 1 }
 0x291   :  { %618 = vsyncpa [#allocation4], 1 }
 0x292   :  { %620 = vsyncpa [#allocation4 + $0x1], 1 }

</bundles_post_ra>
